<compile_context>
chip_gen: v7x
topology: tpu7x:2x2x1
jax: 0.10.0
libtpu: 0.0.40
codegen_flags: <defaults>
</compile_context>

<pallas_src>
import jax
import jax.numpy as jnp
from jax.experimental import pallas as pl
from jax.experimental.pallas import tpu as pltpu


# ---------------------------------------------------------------------------
# Primary path: zero-copy identity (no data movement).
# ---------------------------------------------------------------------------
def _noop_alias_kernel(x_hbm_ref, o_hbm_ref):
    # The output buffer is aliased to the input buffer (input_output_aliases),
    # so there is nothing to compute or move.  `touch` installs a fake
    # read+write dependency on the aliased output so the call is ordered
    # correctly without issuing any HBM<->VMEM DMA.
    del x_hbm_ref
    pltpu.touch(o_hbm_ref)


def _identity_noop(x: jax.Array) -> jax.Array:
    return pl.pallas_call(
        _noop_alias_kernel,
        out_shape=jax.ShapeDtypeStruct(x.shape, x.dtype),
        in_specs=[pl.BlockSpec(memory_space=pl.ANY)],   # leave input in HBM
        out_specs=pl.BlockSpec(memory_space=pl.ANY),    # leave output in HBM
        input_output_aliases={0: 0},
        cost_estimate=pl.CostEstimate(flops=0, transcendentals=0,
                                      bytes_accessed=0),
        compiler_params=pltpu.CompilerParams(has_side_effects=True),
    )(x)


# ---------------------------------------------------------------------------
# Fallback path: lane-dense tiled VMEM copy (only used if the zero-copy
# aliased no-op fails to lower on some backend/runtime combination).
# ---------------------------------------------------------------------------
def _copy_kernel(x_ref, o_ref):
    o_ref[...] = x_ref[...]


def _identity_copy(x: jax.Array) -> jax.Array:
    orig_shape = x.shape
    total = int(x.size)
    if total == 0:
        return x

    itemsize = jnp.dtype(x.dtype).itemsize
    sub = max(8, 32 // itemsize)      # sublane multiple: 8 f32 / 16 bf16 / 32 int8

    # Lane-dense 2-D view (rows, L) with L a multiple of 128 -> full-width vst.
    lane_width = None
    for cand in (1024, 512, 256, 128):
        if total % cand == 0:
            lane_width = cand
            break

    flat = x.reshape(total)
    pad = 0
    if lane_width is None:
        # Awkward total size: pad to a multiple of 128 outside the kernel,
        # run the same lane-dense tiled copy, slice back afterwards.
        lane_width = 128
        pad = (-total) % lane_width
        flat = jnp.pad(flat, (0, pad))
    padded_total = total + pad
    rows = padded_total // lane_width
    x2d = flat.reshape(rows, lane_width)

    # ~4 MiB tiles already reach ~85% of the HBM roofline on all generations;
    # 2 arrays x 2 pipeline buffers x 4 MiB = 16 MiB VMEM footprint.
    target_rows = max(sub, (4 << 20) // (lane_width * itemsize))

    # Prefer a sublane-aligned tile row count that evenly divides `rows`
    # (no partial tail block -> no masked stores / odd last DMA).
    tile_rows = None
    for cand in range(min(target_rows, rows), sub - 1, -1):
        if cand % sub == 0 and rows % cand == 0:
            tile_rows = cand
            break

    if tile_rows is not None:
        grid_n = rows // tile_rows
        # Keep the parallel grid even so v7x's two TensorCores get equal work;
        # never split a single-block grid (pure per-step overhead on v5e/v6e).
        if grid_n > 1 and grid_n % 2 == 1 and tile_rows % (2 * sub) == 0:
            tile_rows //= 2
            grid_n *= 2
    elif rows * lane_width * itemsize <= (8 << 20):
        tile_rows = rows              # small array: one full-extent block
        grid_n = 1
    else:
        # No clean divisor near the target (e.g. prime row count): aligned
        # tile with a masked partial tail block.
        tile_rows = max(sub, (target_rows // sub) * sub)
        grid_n = pl.cdiv(rows, tile_rows)

    out2d = pl.pallas_call(
        _copy_kernel,
        out_shape=jax.ShapeDtypeStruct((rows, lane_width), x.dtype),
        grid=(grid_n,),
        in_specs=[pl.BlockSpec((tile_rows, lane_width), lambda i: (i, 0))],
        out_specs=pl.BlockSpec((tile_rows, lane_width), lambda i: (i, 0)),
        cost_estimate=pl.CostEstimate(flops=0, transcendentals=0,
                                      bytes_accessed=2 * padded_total * itemsize),
        compiler_params=pltpu.CompilerParams(
            dimension_semantics=("parallel",),
            # Raise v5e's 16 MiB default scoped limit; leaves headroom on
            # v7x's 64 MiB physical VMEM.
            vmem_limit_bytes=32 << 20,
        ),
    )(x2d)

    out_flat = out2d.reshape(padded_total)
    if pad:
        out_flat = out_flat[:total]
    return out_flat.reshape(orig_shape)


# ---------------------------------------------------------------------------
# Public wrapper.
# ---------------------------------------------------------------------------
def custom_model_forward(x: jax.Array) -> jax.Array:
    """Pallas equivalent of Custom_model.forward (identity pass-through).

    Primary path is a zero-copy aliased no-op kernel (no HBM traffic).  For
    the full benefit, donate the input when jitting, e.g.
    ``jax.jit(custom_model_forward, donate_argnums=0)``; without donation XLA
    inserts one defensive copy to satisfy the alias (still no worse than an
    explicit copy kernel).
    """
    try:
        return _identity_noop(x)
    except Exception:
        # Robustness fallback: lane-dense tiled VMEM copy.
        return _identity_copy(x)


if __name__ == "__main__":
    key = jax.random.PRNGKey(0)
    # Small NCHW input consistent with a conv-style model input.
    x = jax.random.normal(key, (2, 4, 16, 16), dtype=jnp.float32)

    y = custom_model_forward(x)
    jax.block_until_ready(y)

    # Sanity check: identity semantics (x is not donated here, so it remains
    # readable after the aliased call).
    assert y.shape == x.shape
    assert y.dtype == x.dtype
    assert jnp.array_equal(y, x)

    print("KERNEL_OK")
</pallas_src>

<mosaic_0001>
module attributes {stable_mosaic.version = 11 : i64} {
  func.func @_noop_alias_kernel(%arg0: memref<2x4x16x16xf32, #tpu.memory_space<any>>, %arg1: memref<2x4x16x16xf32, #tpu.memory_space<any>>) attributes {dimension_semantics = [], scalar_prefetch = 0 : i64, scratch_operands = 0 : i64, tpu.core_type = #tpu.core_type<tc>} {
    return
  }
}

module attributes {stable_mosaic.version = 11 : i64} {
  func.func @_copy_kernel(%arg0: i32, %arg1: memref<2x1024xf32, #tpu.memory_space<vmem>>, %arg2: memref<2x1024xf32, #tpu.memory_space<vmem>>) attributes {dimension_semantics = [#tpu.dimension_semantics<parallel>], iteration_bounds = array<i64: 1>, scalar_prefetch = 0 : i64, scratch_operands = 0 : i64, tpu.core_type = #tpu.core_type<tc>, window_params = [{transform_indices = @transform_0, window_bounds = array<i64: 2, 1024>}, {transform_indices = @transform_1, window_bounds = array<i64: 2, 1024>}]} {
    %c0 = arith.constant 0 : index
    %c0_0 = arith.constant 0 : index
    %0 = vector.load %arg1[%c0, %c0_0] : memref<2x1024xf32, #tpu.memory_space<vmem>>, vector<2x1024xf32>
    %c0_1 = arith.constant 0 : index
    %c0_2 = arith.constant 0 : index
    %1 = vector.load %arg2[%c0_1, %c0_2] : memref<2x1024xf32, #tpu.memory_space<vmem>>, vector<2x1024xf32>
    tpu.vector_store %arg2[%c0_1, %c0_2], %0 {strides = array<i32>} : memref<2x1024xf32, #tpu.memory_space<vmem>>, vector<2x1024xf32>,
    return
  }
  func.func @transform_0(%arg0: i32) -> (i32, i32) {
    %c0_i32 = arith.constant 0 : i32
    %c0_i32_0 = arith.constant 0 : i32
    return %arg0, %c0_i32 : i32, i32
  }
  func.func @transform_1(%arg0: i32) -> (i32, i32) {
    %c0_i32 = arith.constant 0 : i32
    %c0_i32_0 = arith.constant 0 : i32
    return %arg0, %c0_i32 : i32, i32
  }
}

</mosaic_0001>

<bundles_post_ra>
// kernel: tpu_custom_call.1
= control target key start
LH: loop header
LB: loop body
LE: loop exit
PB: predicated region body
PF: predicated region fallthrough
CT: control target
= control target key end

     0   :  { %s16_s0 = inlined_call_operand.hbm [shape: f32[2,4,16,16], index: 0, kind: input, shape index: {}, may-alias: {0,1}]   ;;  %s17_s1 = inlined_call_operand.hbm [shape: f32[2,4,16,16], index: 1, kind: output, shape index: {}, may-alias: {0,1}]  }

// kernel: tpu_custom_call.1
= control target key start
LH: loop header
LB: loop body
LE: loop exit
PB: predicated region body
PF: predicated region fallthrough
CT: control target
= control target key end

     0   :  { %6 = vsyncpa [#allocation3], 0  ;;  %s126_s0 = inlined_call_operand.hbm [shape: f32[2,1024], index: 0, kind: input, shape index: {}]   ;;  %s127_s1 = inlined_call_operand.hbm [shape: f32[2,1024], index: 1, kind: output, shape index: {}]  }
   0x1   :  { %7 = vsyncpa [#allocation4], 0  ;;  %s90_s6 = smov [#allocation2]   ;;  %s42_s10 = scalar_lea.hbm %s126_s0, 256 }
   0x2   :  { %s14_s7 = sshll.u32 %s90_s6, 4  ;;  %p43_p0 = scmp.ne.s32.totalorder %s126_s0, %s42_s10  ;;  %s15_s7 = int_to_ptr.vmem [resolvable:$true] %s14_s7 }
   0x3   :  { %p46_p1 = scmp.lt.u32.totalorder %s42_s10, %s126_s0 }
   0x5   :  { %p48_p2 = pnand %p46_p1, %p43_p0 }
   0x7   :  { %51 = shalt.err (!%p48_p2)
}
   0x8   :  { %s52_s15 = scalar_lea.vmem %s15_s7, 256  ;;  %p57_p4 = scmp.lt.s32.totalorder %s15_s7, %s15_s7 }
   0x9   :  { %p53_p3 = scmp.ne.s32.totalorder %s15_s7, %s52_s15  ;;  %p58_p5 = scmp.lt.s32.totalorder %s52_s15, %s52_s15 }
   0xb   :  { %p59_p6 = por %p58_p5, %p57_p4 }
   0xd   :  { %p60_p7 = pnand %p59_p6, %p53_p3 }
   0xf   :  { %63 = shalt.err (!%p60_p7)
}
  0x10   :  { %17 = dma.hbm_to_vmem [thread:$0]  %s126_s0, 256, %s15_s7, [#allocation3]  }
  0x11   :  { %86 = dma.done.wait [#allocation3], 256  }
  0x12   :  { %87 = vsyncadd [#allocation3], 4294967040  ;;  %s91_s18 = smov [#allocation5]   ;;  %v21_v0 = vld [vmem:[#allocation2] sm:$0xff]  ;;  %v22_v1 = vld [vmem:[#allocation2 + $0x8] sm:$0xff] }
  0x13   :  { %s31_s19 = sshll.u32 %s91_s18, 4  ;;  %23 = vst [vmem:[#allocation5] sm:$0xff] %v21_v0  ;;  %24 = vst [vmem:[#allocation5 + $0x8] sm:$0xff] %v22_v1  ;;  %s32_s19 = int_to_ptr.vmem [resolvable:$true] %s31_s19 }
  0x14   :  { %s64_s20 = scalar_lea.vmem %s32_s19, 256  ;;  %p69_p9 = scmp.lt.s32.totalorder %s32_s19, %s32_s19 }
  0x15   :  { %p65_p8 = scmp.ne.s32.totalorder %s32_s19, %s64_s20  ;;  %p70_p10 = scmp.lt.s32.totalorder %s64_s20, %s64_s20 }
  0x17   :  { %p71_p11 = por %p70_p10, %p69_p9 }
  0x19   :  { %p72_p12 = pnand %p71_p11, %p65_p8 }
  0x1b   :  { %75 = shalt.err (!%p72_p12)
}
  0x1c   :  { %s76_s0 = scalar_lea.hbm %s127_s1, 256 }
  0x1d   :  { %p77_p13 = scmp.ne.s32.totalorder %s127_s1, %s76_s0  ;;  %p80_p0 = scmp.lt.u32.totalorder %s76_s0, %s127_s1 }
  0x1f   :  { %p82_p1 = pnand %p80_p0, %p77_p13 }
  0x21   :  { %85 = shalt.err (!%p82_p1)
}
  0x22   :  { %34 = dma.vmem_to_hbm [thread:$0]  %s32_s19, 256, %s127_s1, [#allocation4]  }
  0x23   :  { %88 = dma.done.wait [#allocation4], 256  }
  0x24   :  { %89 = vsyncadd [#allocation4], 4294967040 }
  0x25   :  { %38 = vsyncpa [#allocation3], 1 }
  0x26   :  { %39 = vsyncpa [#allocation4], 1 }

</bundles_post_ra>
